<compile_context>
chip_gen: v7x
topology: tpu7x:2x2x1
jax: 0.10.0
libtpu: 0.0.40
codegen_flags: <defaults>
</compile_context>

<pallas_src>
import functools

import jax
import jax.numpy as jnp
from jax.experimental import pallas as pl
from jax.experimental.pallas import tpu as pltpu


# ---------------------------------------------------------------------------
# Fused kernel: embedding lookup + causal prev-mean + per-block CE partial sum
# ---------------------------------------------------------------------------
def _fused_kernel(x_ref, y_ref, emb_ref, w_ref, logits_ref, part_ref,
                  *, batches_per_block, seq_len, n_valid_rows):
    """One grid step processes `batches_per_block` whole batches (NT rows).

    x_ref      (NT, 1)      int32  token ids for this block (padded rows = 0)
    y_ref      (NT, 1)      int32  target ids for this block (padded rows = 0)
    emb_ref    (V, C)       f32    full embedding table (constant index map)
    w_ref      (T, T)       f32    causal row-mean weights (constant index map)
    logits_ref (NT, C)             raw embedding logits output (module output #1)
    part_ref   (1, 8, 128)  f32    block-local CE partial sum (lane-dense tile)
    """
    NT = x_ref.shape[0]
    V, C = emb_ref.shape
    bb, T = batches_per_block, seq_len

    # ---- embedding lookup as one-hot MXU matmul (replaces per-row gather) ---
    x_ids = x_ref[...]                                               # (NT, 1)
    # Single iota reused for both the x one-hot and the y target select (V==C).
    cls_iota = jax.lax.broadcasted_iota(jnp.int32, (NT, C), 1)
    onehot = (cls_iota == x_ids).astype(jnp.float32)                 # (NT, V)
    logits = jnp.dot(onehot, emb_ref[...].astype(jnp.float32),
                     preferred_element_type=jnp.float32)             # (NT, C)
    logits_ref[...] = logits.astype(logits_ref.dtype)

    # ---- causal prev-mean: per-batch (T,T) contraction (batched MXU matmul) -
    logits3 = logits.reshape(bb, T, C)                               # layout-free (T % 8 == 0)
    w_b = jnp.broadcast_to(w_ref[...].astype(jnp.float32), (bb, T, T))
    prev = jnp.einsum('bst,btc->bsc', w_b, logits3,
                      preferred_element_type=jnp.float32).reshape(NT, C)

    # ---- cross-entropy: logsumexp + one-hot target select, single pass ------
    y_ids = y_ref[...]                                               # (NT, 1)
    m = jnp.max(prev, axis=-1, keepdims=True)
    lse = m + jnp.log(jnp.sum(jnp.exp(prev - m), axis=-1, keepdims=True))
    tgt = jnp.sum(jnp.where(cls_iota == y_ids, prev, 0.0),
                  axis=-1, keepdims=True)                            # (NT, 1)

    # Mask out rows that are batch-padding (global row index >= n_valid_rows).
    row_iota = jax.lax.broadcasted_iota(jnp.int32, (NT, 1), 0)
    global_row = pl.program_id(0) * NT + row_iota
    valid = (global_row < n_valid_rows).astype(jnp.float32)
    psum = jnp.sum((lse - tgt) * valid)

    part_ref[...] = jnp.broadcast_to(psum, part_ref.shape).astype(jnp.float32)


# ---------------------------------------------------------------------------
# Wrapper (mirrors Model.forward with y provided)
# ---------------------------------------------------------------------------
def forward(x, y, emb_table, *, rows_per_block=2048):
    B, T = x.shape
    V, C = emb_table.shape
    assert V == C, "Model uses nn.Embedding(vocab_size, vocab_size) (V == C)."
    N = B * T

    # Batches per grid step: as many as fit the row budget; pad B up to a
    # multiple of bb (padded rows are masked out of the CE sum) instead of
    # shrinking bb for awkward B.
    bb = max(1, min(B, rows_per_block // max(T, 1)))
    if T % 8 != 0:
        bb = B  # single block: block shape equals full array dims (layout escape)
    nb = -(-B // bb)          # ceil(B / bb)
    B_pad = nb * bb
    NT = bb * T
    N_pad = B_pad * T

    x_flat = x.reshape(N).astype(jnp.int32)
    y_flat = y.reshape(N).astype(jnp.int32)
    if N_pad > N:
        pad = N_pad - N
        x_flat = jnp.concatenate([x_flat, jnp.zeros((pad,), jnp.int32)])
        y_flat = jnp.concatenate([y_flat, jnp.zeros((pad,), jnp.int32)])
    x_flat = x_flat.reshape(N_pad, 1)
    y_flat = y_flat.reshape(N_pad, 1)

    # Causal row-mean weights (== softmax of -inf-masked zeros), built ONCE.
    counts = jnp.arange(1, T + 1, dtype=jnp.float32)[:, None]
    w_t = jnp.tril(jnp.ones((T, T), jnp.float32)) / counts          # (T, T)

    kernel = functools.partial(_fused_kernel, batches_per_block=bb,
                               seq_len=T, n_valid_rows=N)

    flops_per_block = 2 * NT * V * C + 2 * bb * T * T * C + 8 * NT * C
    cost = pl.CostEstimate(
        flops=nb * flops_per_block,
        transcendentals=nb * (NT * C + NT),
        bytes_accessed=4 * (2 * N_pad + V * C + T * T + N_pad * C + nb * 8 * 128),
    )

    logits_flat, partials = pl.pallas_call(
        kernel,
        out_shape=(
            jax.ShapeDtypeStruct((N_pad, C), emb_table.dtype),
            jax.ShapeDtypeStruct((nb, 8, 128), jnp.float32),
        ),
        grid_spec=pltpu.PrefetchScalarGridSpec(
            num_scalar_prefetch=0,
            grid=(nb,),
            in_specs=[
                pl.BlockSpec((NT, 1), lambda i: (i, 0)),        # x ids
                pl.BlockSpec((NT, 1), lambda i: (i, 0)),        # y ids
                pl.BlockSpec((V, C), lambda i: (0, 0)),         # embedding table
                pl.BlockSpec((T, T), lambda i: (0, 0)),         # prev-mean weights
            ],
            out_specs=[
                pl.BlockSpec((NT, C), lambda i: (i, 0)),        # raw logits
                pl.BlockSpec((1, 8, 128), lambda i: (i, 0, 0)), # per-block CE sum
            ],
        ),
        compiler_params=pltpu.CompilerParams(
            dimension_semantics=("parallel",),   # blocks are independent now
        ),
        cost_estimate=cost,
    )(x_flat, y_flat, emb_table, w_t)

    loss = jnp.sum(partials[:, 0, 0]) / jnp.float32(N)
    return logits_flat[:N].reshape(B, T, C), loss


# ---------------------------------------------------------------------------
# Pure-JAX reference for sanity checking
# ---------------------------------------------------------------------------
def forward_ref(x, y, emb_table):
    logits = emb_table[x]                         # (B, T, C)
    B, T, C = logits.shape
    counts = jnp.arange(1, T + 1, dtype=jnp.float32)[:, None]
    avg = jnp.tril(jnp.ones((T, T), jnp.float32)) / counts
    lpm = jnp.einsum("st,btc->bsc", avg, logits)
    flat = lpm.reshape(B * T, C)
    yf = y.reshape(B * T)
    lse = jax.nn.logsumexp(flat, axis=-1)
    tgt = flat[jnp.arange(B * T), yf]
    return logits, jnp.mean(lse - tgt)


if __name__ == "__main__":
    key = jax.random.PRNGKey(0)
    k_emb, k_x, k_y = jax.random.split(key, 3)

    vocab_size = 128   # C == V, lane-dense
    B, T = 2, 8

    # nn.Embedding default init ~ N(0, 1)
    emb_table = jax.random.normal(k_emb, (vocab_size, vocab_size), dtype=jnp.float32)
    x = jax.random.randint(k_x, (B, T), 0, vocab_size, dtype=jnp.int32)
    y = jax.random.randint(k_y, (B, T), 0, vocab_size, dtype=jnp.int32)

    logits, loss = forward(x, y, emb_table)
    jax.block_until_ready((logits, loss))

    logits_r, loss_r = forward_ref(x, y, emb_table)
    assert jnp.allclose(logits, logits_r, atol=1e-5), "logits mismatch"
    assert jnp.allclose(loss, loss_r, atol=1e-4, rtol=1e-4), "loss mismatch"

    print("KERNEL_OK")
</pallas_src>

<mosaic_0001>
module attributes {stable_mosaic.version = 11 : i64} {
  func.func @_fused_kernel(%arg0: i32, %arg1: memref<16x1xi32, #tpu.memory_space<vmem>>, %arg2: memref<16x1xi32, #tpu.memory_space<vmem>>, %arg3: memref<128x128xf32, #tpu.memory_space<vmem>>, %arg4: memref<8x8xf32, #tpu.memory_space<vmem>>, %arg5: memref<16x128xf32, #tpu.memory_space<vmem>>, %arg6: memref<1x8x128xf32, #tpu.memory_space<vmem>>) attributes {dimension_semantics = [#tpu.dimension_semantics<parallel>], iteration_bounds = array<i64: 1>, scalar_prefetch = 0 : i64, scratch_operands = 0 : i64, tpu.core_type = #tpu.core_type<tc>, window_params = [{transform_indices = @transform_0, window_bounds = array<i64: 16, 1>}, {transform_indices = @transform_1, window_bounds = array<i64: 16, 1>}, {pipeline_mode = #tpu.pipeline_mode<synchronous>, transform_indices = @transform_2, window_bounds = array<i64: 128, 128>}, {pipeline_mode = #tpu.pipeline_mode<synchronous>, transform_indices = @transform_3, window_bounds = array<i64: 8, 8>}, {transform_indices = @transform_4, window_bounds = array<i64: 16, 128>}, {transform_indices = @transform_5, window_bounds = array<i64: 1, 8, 128>}]} {
    %c0 = arith.constant 0 : index
    %c0_0 = arith.constant 0 : index
    %0 = vector.load %arg1[%c0, %c0_0] : memref<16x1xi32, #tpu.memory_space<vmem>>, vector<16x1xi32>
    %1 = tpu.iota {dimensions = array<i32: 1>} : vector<16x128xi32>
    %2 = vector.broadcast %0 : vector<16x1xi32> to vector<16x128xi32>
    %3 = arith.cmpi eq, %1, %2 : vector<16x128xi32>
    %4 = arith.extui %3 : vector<16x128xi1> to vector<16x128xi32>
    %5 = arith.sitofp %4 : vector<16x128xi32> to vector<16x128xf32>
    %c0_1 = arith.constant 0 : index
    %c0_2 = arith.constant 0 : index
    %6 = vector.load %arg3[%c0_1, %c0_2] : memref<128x128xf32, #tpu.memory_space<vmem>>, vector<128x128xf32>
    %cst = arith.constant dense<0.000000e+00> : vector<16x128xf32>
    %7 = tpu.matmul %5, %6, %cst {dimension_numbers = #tpu.dot_dimension_numbers<[1], [0], [0], [1], [0, 0, 1, 1], [], []>} : vector<16x128xf32>, vector<128x128xf32>, vector<16x128xf32> -> vector<16x128xf32>
    %c0_3 = arith.constant 0 : index
    %c0_4 = arith.constant 0 : index
    %8 = vector.load %arg5[%c0_3, %c0_4] : memref<16x128xf32, #tpu.memory_space<vmem>>, vector<16x128xf32>
    tpu.vector_store %arg5[%c0_3, %c0_4], %7 {strides = array<i32>} : memref<16x128xf32, #tpu.memory_space<vmem>>, vector<16x128xf32>,
    %9 = vector.shape_cast %7 : vector<16x128xf32> to vector<2x8x128xf32>
    %c0_5 = arith.constant 0 : index
    %c0_6 = arith.constant 0 : index
    %10 = vector.load %arg4[%c0_5, %c0_6] : memref<8x8xf32, #tpu.memory_space<vmem>>, vector<8x8xf32>
    %11 = vector.shape_cast %10 : vector<8x8xf32> to vector<1x8x8xf32>
    %12 = vector.broadcast %11 : vector<1x8x8xf32> to vector<2x8x8xf32>
    "tpu.trace_start"() <{level = 10 : i32, message = "bst,btc->bsc"}> : () -> ()
    %cst_7 = arith.constant dense<0.000000e+00> : vector<2x8x128xf32>
    %13 = tpu.matmul %12, %9, %cst_7 {dimension_numbers = #tpu.dot_dimension_numbers<[2], [1], [1], [2], [0, 0, 0, 1, 1, 2], [0], [0]>} : vector<2x8x8xf32>, vector<2x8x128xf32>, vector<2x8x128xf32> -> vector<2x8x128xf32>
    "tpu.trace_stop"() : () -> ()
    %14 = vector.shape_cast %13 : vector<2x8x128xf32> to vector<16x128xf32>
    %c0_8 = arith.constant 0 : index
    %c0_9 = arith.constant 0 : index
    %15 = vector.load %arg2[%c0_8, %c0_9] : memref<16x1xi32, #tpu.memory_space<vmem>>, vector<16x1xi32>
    %cst_10 = arith.constant dense<0xFF800000> : vector<16xf32>
    %16 = vector.multi_reduction <maximumf>, %14, %cst_10 [1] : vector<16x128xf32> to vector<16xf32>
    %17 = vector.shape_cast %16 : vector<16xf32> to vector<16x1xf32>
    %18 = vector.broadcast %17 : vector<16x1xf32> to vector<16x128xf32>
    %19 = arith.subf %14, %18 : vector<16x128xf32>
    %20 = math.exp %19 : vector<16x128xf32>
    %cst_11 = arith.constant dense<0.000000e+00> : vector<16xf32>
    %21 = vector.multi_reduction <add>, %20, %cst_11 [1] : vector<16x128xf32> to vector<16xf32>
    %22 = vector.shape_cast %21 : vector<16xf32> to vector<16x1xf32>
    %23 = math.log %22 : vector<16x1xf32>
    %24 = arith.addf %17, %23 : vector<16x1xf32>
    %25 = vector.broadcast %15 : vector<16x1xi32> to vector<16x128xi32>
    %26 = arith.cmpi eq, %1, %25 : vector<16x128xi32>
    %cst_12 = arith.constant 0.000000e+00 : f32
    %27 = vector.broadcast %cst_12 : f32 to vector<16x128xf32>
    %28 = arith.select %26, %14, %27 : vector<16x128xi1>, vector<16x128xf32>
    %cst_13 = arith.constant dense<0.000000e+00> : vector<16xf32>
    %29 = vector.multi_reduction <add>, %28, %cst_13 [1] : vector<16x128xf32> to vector<16xf32>
    %30 = vector.shape_cast %29 : vector<16xf32> to vector<16x1xf32>
    %31 = tpu.iota {dimensions = array<i32: 0>} : vector<16x1xi32>
    %c16_i32 = arith.constant 16 : i32
    %32 = arith.muli %arg0, %c16_i32 : i32
    %33 = vector.broadcast %32 : i32 to vector<16x1xi32>
    %34 = arith.addi %33, %31 : vector<16x1xi32>
    %c16_i32_14 = arith.constant 16 : i32
    %35 = vector.broadcast %c16_i32_14 : i32 to vector<16x1xi32>
    %36 = arith.cmpi slt, %34, %35 : vector<16x1xi32>
    %37 = arith.extui %36 : vector<16x1xi1> to vector<16x1xi32>
    %38 = arith.sitofp %37 : vector<16x1xi32> to vector<16x1xf32>
    %39 = arith.subf %24, %30 : vector<16x1xf32>
    %40 = arith.mulf %39, %38 : vector<16x1xf32>
    %41 = vector.shape_cast %40 : vector<16x1xf32> to vector<1x16x1xf32>
    %cst_15 = arith.constant dense<0.000000e+00> : vector<1xf32>
    %42 = vector.multi_reduction <add>, %41, %cst_15 [1, 2] : vector<1x16x1xf32> to vector<1xf32>
    %43 = vector.shape_cast %42 : vector<1xf32> to vector<1x1x1xf32>
    %44 = vector.extract %43[0, 0, 0] : f32 from vector<1x1x1xf32>
    %45 = vector.broadcast %44 : f32 to vector<1x8x128xf32>
    %c0_16 = arith.constant 0 : index
    %c0_17 = arith.constant 0 : index
    %c0_18 = arith.constant 0 : index
    %46 = vector.load %arg6[%c0_16, %c0_17, %c0_18] : memref<1x8x128xf32, #tpu.memory_space<vmem>>, vector<1x8x128xf32>
    tpu.vector_store %arg6[%c0_16, %c0_17, %c0_18], %45 {strides = array<i32>} : memref<1x8x128xf32, #tpu.memory_space<vmem>>, vector<1x8x128xf32>,
    return
  }
  func.func @transform_0(%arg0: i32) -> (i32, i32) {
    %c0_i32 = arith.constant 0 : i32
    %c0_i32_0 = arith.constant 0 : i32
    return %arg0, %c0_i32 : i32, i32
  }
  func.func @transform_1(%arg0: i32) -> (i32, i32) {
    %c0_i32 = arith.constant 0 : i32
    %c0_i32_0 = arith.constant 0 : i32
    return %arg0, %c0_i32 : i32, i32
  }
  func.func @transform_2(%arg0: i32) -> (i32, i32) {
    %c0_i32 = arith.constant 0 : i32
    %c0_i32_0 = arith.constant 0 : i32
    %c0_i32_1 = arith.constant 0 : i32
    return %c0_i32, %c0_i32_0 : i32, i32
  }
  func.func @transform_3(%arg0: i32) -> (i32, i32) {
    %c0_i32 = arith.constant 0 : i32
    %c0_i32_0 = arith.constant 0 : i32
    %c0_i32_1 = arith.constant 0 : i32
    return %c0_i32, %c0_i32_0 : i32, i32
  }
  func.func @transform_4(%arg0: i32) -> (i32, i32) {
    %c0_i32 = arith.constant 0 : i32
    %c0_i32_0 = arith.constant 0 : i32
    return %arg0, %c0_i32 : i32, i32
  }
  func.func @transform_5(%arg0: i32) -> (i32, i32, i32) {
    %c0_i32 = arith.constant 0 : i32
    %c0_i32_0 = arith.constant 0 : i32
    %c0_i32_1 = arith.constant 0 : i32
    return %arg0, %c0_i32, %c0_i32_0 : i32, i32, i32
  }
}

</mosaic_0001>

<bundles_post_ra>
// kernel: tpu_custom_call.1
= control target key start
LH: loop header
LB: loop body
LE: loop exit
PB: predicated region body
PF: predicated region fallthrough
CT: control target
= control target key end

     0   :  { %11 = vsyncpa [#allocation3], 0  ;;  %s682_s0 = inlined_call_operand.vmem [shape: s32[16,1], index: 0, kind: input, shape index: {}]   ;;  %s683_s1 = inlined_call_operand.vmem [shape: s32[16,1], index: 1, kind: input, shape index: {}]   ;;  %s684_s2 = inlined_call_operand.hbm [shape: f32[128,128], index: 2, kind: input, shape index: {}]   ;;  %s685_s3 = inlined_call_operand.vmem [shape: f32[8,8], index: 3, kind: input, shape index: {}]   ;;  %s686_s4 = inlined_call_operand.hbm [shape: f32[16,128], index: 4, kind: output, shape index: {0}]   ;;  %s687_s5 = inlined_call_operand.hbm [shape: f32[1,8,128], index: 5, kind: output, shape index: {1}]  }
   0x1   :  { %12 = vsyncpa [#allocation4], 0 }
   0x2   :  { %13 = vsyncpa [#allocation7], 0  ;;  %s586_s18 = smov [#allocation2]   ;;  %s514_s22 = scalar_lea.hbm %s684_s2, 2048 }
   0x3   :  { %s23_s19 = sshll.u32 %s586_s18, 4  ;;  %p515_p0 = scmp.ne.s32.totalorder %s684_s2, %s514_s22  ;;  %s24_s19 = int_to_ptr.vmem [resolvable:$true] %s23_s19 }
   0x4   :  { %p518_p1 = scmp.lt.u32.totalorder %s514_s22, %s684_s2 }
   0x6   :  { %p520_p2 = pnand %p518_p1, %p515_p0 }
   0x8   :  { %523 = shalt.err (!%p520_p2)
}
   0x9   :  { %s524_s27 = scalar_lea.vmem %s24_s19, 2048  ;;  %p529_p4 = scmp.lt.s32.totalorder %s24_s19, %s24_s19 }
   0xa   :  { %p525_p3 = scmp.ne.s32.totalorder %s24_s19, %s524_s27  ;;  %p530_p5 = scmp.lt.s32.totalorder %s524_s27, %s524_s27 }
   0xc   :  { %p531_p6 = por %p530_p5, %p529_p4 }
   0xe   :  { %p532_p7 = pnand %p531_p6, %p525_p3 }
  0x10   :  { %535 = shalt.err (!%p532_p7)
}
  0x11   :  { %s587_s28 = smov 128   ;;  %s588_s29 = smov 8  }
  0x12   :  { %29 = dma.hbm_to_vmem [thread:$0]  %s684_s2, 2048, %s24_s19, [#allocation3], %s587_s28, %s587_s28, %s588_s29  }
  0x13   :  { %580 = dma.done.wait [#allocation3], 2048  }
  0x14   :  { %581 = vsyncadd [#allocation3], 4294965248  ;;  %v589_v0 = vmov 0   ;;  %v35_v1 = vld [vmem:[%s682_s0] sm:$0xff]  ;;  %v51_v2 = vld [vmem:[#allocation2] sm:$0xff]  ;;  %v37_v28 = vlaneseq  ;;  %v590_v31 = vmov 1.0  }
  0x15   :  { %504 = vset.pattern.permute.xlu0 %v589_v0  ;;  %505 = vset.pattern.permute.xlu1 %v589_v0  ;;  %v52_v3 = vld [vmem:[#allocation2 + $0x8] sm:$0xff]  ;;  %v53_v4 = vld [vmem:[#allocation2 + $0x10] sm:$0xff]  ;;  %v36_v5 = vld [vmem:[%s682_s0 + $0x8] sm:$0xff]  ;;  %v591_v33 = vmov 0.0   ;;  %vm592_vm2 = vmmov 0   ;;  %vm145_vm3 = vcmask 64512  }
  0x16   :  { %40 = vperm.xlu0 %504, %v35_v1   ;;  %v461_v6 = vpack.c.bf16 %v52_v3, %v51_v2  ;;  %v54_v7 = vld [vmem:[#allocation2 + $0x18] sm:$0xff]  ;;  %v55_v9 = vld [vmem:[#allocation2 + $0x20] sm:$0xff]  ;;  %v56_v10 = vld [vmem:[#allocation2 + $0x28] sm:$0xff]  ;;  %v38_v29 = vand.u32 127, %v37_v28  ;;  %451 = vmatprep.subr.mxu1 %v591_v33  ;;  %vm342_vm6 = vcmask 7168  }
  0x17   :  { %v465_v8 = vpack.c.bf16 %v54_v7, %v53_v4  ;;  %v289_v11 = vld [vmem:[%s683_s1] sm:$0xff]  ;;  %v469_v12 = vpack.c.bf16 %v56_v10, %v55_v9  ;;  %v58_v14 = vld [vmem:[#allocation2 + $0x38] sm:$0xff]  ;;  %v59_v16 = vld [vmem:[#allocation2 + $0x40] sm:$0xff]  ;;  %453 = vmatprep.mubr.msk.f32.mxu1 %vm592_vm2, %v591_v33 }
  0x18   :  { %462 = vmatprep.subr.bf16.mxu0 %v461_v6  ;;  %v57_v13 = vld [vmem:[#allocation2 + $0x30] sm:$0xff]  ;;  %v60_v17 = vld [vmem:[#allocation2 + $0x48] sm:$0xff]  ;;  %v62_v20 = vld [vmem:[#allocation2 + $0x58] sm:$0xff] }
  0x19   :  { %464 = vmatpush3.bf16.msra.mxu0 %v461_v6  ;;  %v473_v15 = vpack.c.bf16 %v58_v14, %v57_v13  ;;  %v477_v18 = vpack.c.bf16 %v60_v17, %v59_v16  ;;  %v61_v19 = vld [vmem:[#allocation2 + $0x50] sm:$0xff]  ;;  %v63_v22 = vld [vmem:[#allocation2 + $0x60] sm:$0xff]  ;;  %v64_v23 = vld [vmem:[#allocation2 + $0x68] sm:$0xff] }
  0x1a   :  { %43 = vperm.xlu0 %504, %v36_v5   ;;  %466 = vmatprep.subr.bf16.mxu0 %v465_v8  ;;  %v481_v21 = vpack.c.bf16 %v62_v20, %v61_v19  ;;  %v485_v24 = vpack.c.bf16 %v64_v23, %v63_v22  ;;  %v65_v25 = vld [vmem:[#allocation2 + $0x70] sm:$0xff]  ;;  %v66_v26 = vld [vmem:[#allocation2 + $0x78] sm:$0xff] }
  0x1b   :  { %v489_v27 = vpack.c.bf16 %v66_v26, %v65_v25  ;;  %v144_v35 = vld [vmem:[%s685_s3] sm:$0xff]  ;;  %v290_v41 = vld [vmem:[%s683_s1 + $0x8] sm:$0xff]  ;;  %s593_s1 = smov [#allocation5]  }
  0x1c   :  { %s362_s3 = sshll.u32 %s593_s1, 4  ;;  %s363_s3 = int_to_ptr.vmem [resolvable:$true] %s362_s3 }
  0x1d   :  { %468 = vmatpush3.bf16.msra.mxu0 %v465_v8  ;;  %s536_s15 = scalar_lea.vmem %s363_s3, 256  ;;  %p541_p9 = scmp.lt.s32.totalorder %s363_s3, %s363_s3 }
  0x1e   :  { %312 = vperm.xlu0 %504, %v289_v11   ;;  %470 = vmatprep.subr.bf16.mxu0 %v469_v12  ;;  %p537_p8 = scmp.ne.s32.totalorder %s363_s3, %s536_s15  ;;  %p542_p10 = scmp.lt.s32.totalorder %s536_s15, %s536_s15 }
  0x20   :  { %p543_p11 = por %p542_p10, %p541_p9 }
  0x21   :  { %472 = vmatpush3.bf16.msra.mxu0 %v469_v12 }
  0x22   :  { %474 = vmatprep.subr.bf16.mxu0 %v473_v15  ;;  %p544_p12 = pnand %p543_p11, %p537_p8 }
  0x25   :  { %476 = vmatpush3.bf16.msra.mxu0 %v473_v15 }
  0x26   :  { %478 = vmatprep.subr.bf16.mxu0 %v477_v18 }
  0x29   :  { %480 = vmatpush3.bf16.msra.mxu0 %v477_v18 }
  0x2a   :  { %482 = vmatprep.subr.bf16.mxu0 %v481_v21 }
  0x2d   :  { %484 = vmatpush3.bf16.msra.mxu0 %v481_v21 }
  0x2e   :  { %486 = vmatprep.subr.bf16.mxu0 %v485_v24 }
  0x31   :  { %488 = vmatpush3.bf16.msra.mxu0 %v485_v24 }
  0x32   :  { %490 = vmatprep.subr.bf16.mxu0 %v489_v27 }
  0x35   :  { %492 = vmatpush3.bf16.msra.mxu0 %v489_v27 }
  0x95   :  { %v41_v30 = vpop.permute.xlu0 %40 }
  0x96   :  { %vm45_vm0 = vcmp.eq.s32.totalorder %v38_v29, %v41_v30 }
  0x97   :  { %448 = vmatprep.mubr.msk.f32.mxu0 %vm45_vm0, %v590_v31 }
  0x99   :  { %v44_v32 = vpop.permute.xlu0 %43 }
  0x9a   :  { %vm46_vm1 = vcmp.eq.s32.totalorder %v38_v29, %v44_v32 }
  0x9b   :  { %449 = vmatmul.mubr.msk.f32.vlgmr.msra.gmra.mrb[0].mxu0 %vm46_vm1, %v590_v31 }
  0x9d   :  { %v313_v49 = vpop.permute.xlu0 %312 }
  0x9e   :  { %vm317_vm4 = vcmp.eq.s32.totalorder %v38_v29, %v313_v49 }
 0x16e   :  { %v450_v34 = vpop.f32.mrb[0].mxu0 }
 0x16f   :  { %143 = vst [vmem:[#allocation5 + $0x8] sm:$0xff] %v450_v34  ;;  %v133_v36 = vpop.f32.mrb[1].mxu0 }
 0x170   :  { %142 = vst [vmem:[#allocation5] sm:$0xff] %v133_v36  ;;  %452 = vmatpush3.msra.mxu1 %v133_v36 }
 0x171   :  { %454 = vmatmul.mubr.msk.f32.vlgmr.msra.gmra.mrb[0].mxu1 %vm145_vm3, %v144_v35  ;;  %456 = vmatprep.subr.mxu1 %v591_v33 }
 0x172   :  { %457 = vmatpush3.msra.mxu1 %v450_v34  ;;  %458 = vmatprep.mubr.msk.f32.mxu1 %vm592_vm2, %v591_v33 }
 0x175   :  { %459 = vmatmul.mubr.msk.f32.vlgmr.msra.gmra.mrb[2].mxu1 %vm145_vm3, %v144_v35 }
 0x244   :  { %v215_v37 = vpop.f32.mrb[0].mxu1 }
 0x245   :  { %291 = vmax.xlane.f32.xlu1 %v215_v37  ;;  %v455_v38 = vpop.f32.mrb[1].mxu1  ;;  %v319_v52 = vsel %vm317_vm4, %v215_v37, 0.0 }
 0x248   :  { %v285_v39 = vpop.f32.mrb[2].mxu1 }
 0x249   :  { %293 = vmax.xlane.f32.xlu1 %v285_v39  ;;  %v460_v40 = vpop.f32.mrb[3].mxu1 }
 0x25a   :  { %315 = vperm.xlu1 %505, %v290_v41  }
 0x2d2   :  { %v292_v42 = vpop.xlane.xlu1 %291 }
 0x2d3   :  { %v295_v43 = vsub.f32 %v215_v37, %v292_v42 }
 0x2d5   :  { %v297_v44 = vmul.f32 1.442695, %v295_v43 }
 0x2d6   :  { %v294_v45 = vpop.xlane.xlu1 %293 }
 0x2d7   :  { %506 = vpow2.f32 %v297_v44  ;;  %v296_v46 = vsub.f32 %v285_v39, %v294_v45 }
 0x2d9   :  { %v299_v47 = vmul.f32 1.442695, %v296_v46 }
 0x2da   :  { %v316_v50 = vpop.permute.xlu1 %315 }
 0x2db   :  { %508 = vpow2.f32 %v299_v47  ;;  %vm318_vm5 = vcmp.eq.s32.totalorder %v38_v29, %v316_v50 }
 0x2dc   :  { %v320_v53 = vsel %vm318_vm5, %v285_v39, 0.0 }
 0x2e1   :  { %v507_v48 = vpop.eup %506 }
 0x2e2   :  { %301 = vadd.xlane.f32.xlu0 %v507_v48 }
 0x2e5   :  { %v509_v51 = vpop.eup %508 }
 0x2e6   :  { %303 = vadd.xlane.f32.xlu1 %v509_v51  ;;  %321 = vadd.xlane.f32.xlu0 %v319_v52 }
 0x2ea   :  { %323 = vadd.xlane.f32.xlu0 %v320_v53 }
 0x36f   :  { %v302_v54 = vpop.xlane.xlu0 %301 }
 0x370   :  { %510 = vlog2.f32 %v302_v54 }
 0x373   :  { %v304_v55 = vpop.xlane.xlu1 %303  ;;  %v322_v58 = vpop.xlane.xlu0 %321 }
 0x374   :  { %512 = vlog2.f32 %v304_v55 }
 0x377   :  { %v324_v0 = vpop.xlane.xlu0 %323 }
 0x37a   :  { %v511_v56 = vpop.eup %510 }
 0x37b   :  { %v306_v57 = vmul.f32 0.6931472, %v511_v56 }
 0x37d   :  { %v309_v59 = vadd.f32 %v306_v57, %v292_v42 }
 0x37e   :  { %v513_v60 = vpop.eup %512 }
 0x37f   :  { %v308_v61 = vmul.f32 0.6931472, %v513_v60  ;;  %v338_v62 = vsub.f32 %v309_v59, %v322_v58 }
 0x381   :  { %v310_v63 = vadd.f32 %v308_v61, %v294_v45  ;;  %v343_v2 = vsel %vm342_vm6, %v338_v62, 0.0 }
 0x383   :  { %v339_v1 = vsub.f32 %v310_v63, %v324_v0 }
 0x385   :  { %v344_v3 = vsel %vm342_vm6, %v339_v1, 0.0 }
 0x386   :  { %v345_v4 = vadd.f32 %v344_v3, %v343_v2 }
 0x388   :  { %346 = vadd.xlane.f32.xlu0 %v345_v4 }
 0x389   :  { %547 = shalt.err (!%p544_p12)
}
 0x38a   :  { %s548_s18 = scalar_lea.hbm %s686_s4, 256 }
 0x38b   :  { %p549_p13 = scmp.ne.s32.totalorder %s686_s4, %s548_s18  ;;  %p552_p0 = scmp.lt.u32.totalorder %s548_s18, %s686_s4 }
 0x38d   :  { %p554_p1 = pnand %p552_p0, %p549_p13 }
 0x38f   :  { %557 = shalt.err (!%p554_p1)
}
 0x390   :  { %368 = dma.vmem_to_hbm [thread:$0]  %s363_s3, 256, %s686_s4, [#allocation4], %s587_s28, %s587_s28, %s588_s29  }
 0x391   :  { %s594_s25 = smov [#allocation6]  }
 0x392   :  { %s375_s26 = sshll.u32 %s594_s25, 4  ;;  %s376_s26 = int_to_ptr.vmem [resolvable:$true] %s375_s26 }
 0x393   :  { %s558_s30 = scalar_lea.vmem %s376_s26, 128  ;;  %p563_p3 = scmp.lt.s32.totalorder %s376_s26, %s376_s26 }
 0x394   :  { %p559_p2 = scmp.ne.s32.totalorder %s376_s26, %s558_s30  ;;  %p564_p4 = scmp.lt.s32.totalorder %s558_s30, %s558_s30 }
 0x396   :  { %p565_p5 = por %p564_p4, %p563_p3 }
 0x398   :  { %p566_p6 = pnand %p565_p5, %p559_p2 }
 0x415   :  { %v347_v5 = vpop.xlane.xlu0 %346 }
 0x416   :  { %v348_v6 = vrot.slane %v347_v5, 4 }
 0x418   :  { %v349_v7 = vadd.f32 %v348_v6, %v347_v5 }
 0x41a   :  { %v350_v8 = vrot.slane %v349_v7, 2 }
 0x41c   :  { %v351_v9 = vadd.f32 %v350_v8, %v349_v7 }
 0x41e   :  { %v352_v10 = vrot.slane %v351_v9, 1 }
 0x420   :  { %v353_v11 = vadd.f32 %v352_v10, %v351_v9 }
 0x422   :  { %493 = vpush %v353_v11 }
 0x453   :  { %s494_s27 = spop %493 }
 0x454   :  { %v355_v12 = vstv %s494_s27 }
 0x455   :  { %356 = vst [vmem:[#allocation6] sm:$0xff] %v355_v12 }
 0x456   :  { %569 = shalt.err (!%p566_p6)
}
 0x457   :  { %s570_s29 = scalar_lea.hbm %s687_s5, 128 }
 0x458   :  { %p571_p7 = scmp.ne.s32.totalorder %s687_s5, %s570_s29  ;;  %p574_p8 = scmp.lt.u32.totalorder %s570_s29, %s687_s5 }
 0x45a   :  { %p576_p9 = pnand %p574_p8, %p571_p7 }
 0x45c   :  { %579 = shalt.err (!%p576_p9)
}
 0x45d   :  { %378 = dma.vmem_to_hbm [thread:$0]  %s376_s26, 128, %s687_s5, [#allocation7]  }
 0x45e   :  { %582 = dma.done.wait [#allocation4], 256  }
 0x45f   :  { %583 = vsyncadd [#allocation4], 4294967040 }
 0x460   :  { %584 = dma.done.wait [#allocation7], 128  }
 0x461   :  { %585 = vsyncadd [#allocation7], 4294967168 }
 0x462   :  { %385 = vsyncpa [#allocation3], 1 }
 0x463   :  { %386 = vsyncpa [#allocation4], 1 }
 0x464   :  { %387 = vsyncpa [#allocation7], 1 }

</bundles_post_ra>
